<compile_context>
chip_gen: v7x
topology: tpu7x:2x2x1
jax: 0.10.0
libtpu: 0.0.40
codegen_flags: <defaults>
</compile_context>

<pallas_src>
import jax
import jax.numpy as jnp
from jax.experimental import pallas as pl
from jax.experimental.pallas import tpu as pltpu

T_SCALE = 300.0
Q_SCALE = 0.05
S_SCALE = 10000.0
OFFSET_SCALE = 4.0
OUT_DIV = 280.0

_REVERT = jnp.array([[1.0, -1.0, 1.0],
                     [1.0, -1.0, 1.0],
                     [1.0, -1.0, 1.0]], dtype=jnp.float32)


def _quaternion_to_rotation(q):
    """Vectorized quaternion2RotationTensor: (B, 4) -> (B, 3, 3)."""
    q0, q1, q2, q3 = q[:, 0], q[:, 1], q[:, 2], q[:, 3]
    r00 = q0 * q0 + q1 * q1 - q2 * q2 - q3 * q3
    r01 = 2.0 * (q1 * q2 + q0 * q3)
    r02 = 2.0 * (q1 * q3 - q0 * q2)
    r10 = 2.0 * (q1 * q2 - q0 * q3)
    r11 = q0 * q0 - q1 * q1 + q2 * q2 - q3 * q3
    r12 = 2.0 * (q0 * q1 + q2 * q3)
    r20 = 2.0 * (q0 * q2 + q1 * q3)
    r21 = 2.0 * (q2 * q3 - q0 * q1)
    r22 = q0 * q0 - q1 * q1 - q2 * q2 + q3 * q3
    rows = [jnp.stack([r00, r01, r02], axis=-1),
            jnp.stack([r10, r11, r12], axis=-1),
            jnp.stack([r20, r21, r22], axis=-1)]
    return jnp.stack(rows, axis=-2)


def _rpfq_kernel(coef_ref, off_ref, mean_ref, o_ref):
    # coef_ref : SMEM (B, 12) per batch: A[0,0..2], A[1,0..2], A[2,0..2], t[0..2]
    #            (A and t already include the final 1/280 factor)
    # off_ref  : VMEM (3, TH, W) block of Offset for (row-tile, batch)
    # mean_ref : VMEM (3, TH, W) block of mean_posmap for this row-tile
    # o_ref    : VMEM (3, TH, W) output block
    b = pl.program_id(1)

    # pos_k = Offset_k * offset_scale + mean_k (upcast in-kernel; shared by all
    # three output channels — row_tile is capped so these stay vreg-resident).
    pos0 = off_ref[0].astype(jnp.float32) * OFFSET_SCALE + mean_ref[0].astype(jnp.float32)
    pos1 = off_ref[1].astype(jnp.float32) * OFFSET_SCALE + mean_ref[1].astype(jnp.float32)
    pos2 = off_ref[2].astype(jnp.float32) * OFFSET_SCALE + mean_ref[2].astype(jnp.float32)

    for j in range(3):  # unrolled: 3 output channels
        a0 = coef_ref[b, 3 * j + 0]
        a1 = coef_ref[b, 3 * j + 1]
        a2 = coef_ref[b, 3 * j + 2]
        tj = coef_ref[b, 9 + j]
        o_ref[j] = (a0 * pos0 + a1 * pos1 + a2 * pos2 + tj).astype(o_ref.dtype)


def _pick_row_tile(h, w, b, bytes_per_pixel_all):
    """Row-tile picker: pipelining depth + vreg residency + VMEM budget aware."""
    candidates = [t for t in (256, 128, 64, 32, 16, 8) if h % t == 0]
    if not candidates:
        return h  # full-dim block (always legal)

    # Conservative scratch budget: safe under every generation's default scoped
    # VMEM limit (v5e 16 MiB / v6e,v7x 32 MiB) with headroom for internal scratch.
    budget = 8 * 1024 * 1024
    try:
        budget = min(budget, pltpu.get_tpu_info().vmem_capacity_bytes // 8)
    except Exception:
        pass

    def footprint(t):  # double-buffered blocks: offset + mean + out, 3 channels
        return 2 * 3 * t * w * bytes_per_pixel_all

    # Keep the 3 shared f32 pos planes within ~48 vregs (3 * t * w * 4B <= 192 KiB).
    vreg_rows = max(8, ((16384 // max(w, 1)) // 8) * 8)

    # Largest tile meeting: VMEM budget, vreg residency, >= 8 total grid steps
    # (>= 4 steps per core when the row axis is megacore-sharded on v7x).
    for t in candidates:
        if footprint(t) <= budget and t <= vreg_rows and (h // t) * b >= 8:
            return t
    # Relax step-count / vreg constraints: largest tile fitting the budget.
    for t in candidates:
        if footprint(t) <= budget:
            return t
    return candidates[-1]


def rpfq_forward(offset, q, t, mean_posmap, out_dtype=jnp.float32):
    """JAX/Pallas equivalent of RPFQModule.forward(Offset, Q, T)."""
    b, c, h, w = offset.shape
    assert c == 3 and mean_posmap.shape == (3, h, w)

    # ---- tiny per-batch scalar glue (12 floats per batch) -------------------
    q = q.astype(jnp.float32)
    t = t.astype(jnp.float32)
    rot = _quaternion_to_rotation(q * Q_SCALE)                     # (B, 3, 3)
    a_mat = rot * (_REVERT * (S_SCALE / OUT_DIV))[None]            # fold /280 into A
    trans = t * (T_SCALE / OUT_DIV)                                # fold /280 into t
    coef = jnp.concatenate([a_mat.reshape(b, 9), trans], axis=-1).astype(jnp.float32)

    # ---- tiling: lane-dense blocks (row_tile rows x full W lanes) ------------
    bytes_per_pixel_all = (jnp.dtype(offset.dtype).itemsize
                           + jnp.dtype(mean_posmap.dtype).itemsize
                           + jnp.dtype(out_dtype).itemsize)
    row_tile = _pick_row_tile(h, w, b, bytes_per_pixel_all)
    # Row-tile outer (megacore-sharded), batch inner so the mean block stays resident.
    grid = (h // row_tile, b) if h % row_tile == 0 else (1, b)
    if h % row_tile != 0:
        row_tile = h

    bytes_accessed = (offset.size * jnp.dtype(offset.dtype).itemsize
                      + mean_posmap.size * jnp.dtype(mean_posmap.dtype).itemsize
                      + b * 3 * h * w * jnp.dtype(out_dtype).itemsize)
    cost = pl.CostEstimate(flops=24 * b * h * w, transcendentals=0,
                           bytes_accessed=int(bytes_accessed))

    out = pl.pallas_call(
        _rpfq_kernel,
        out_shape=jax.ShapeDtypeStruct((b, 3, h, w), out_dtype),
        grid=grid,
        in_specs=[
            pl.BlockSpec(memory_space=pltpu.MemorySpace.SMEM),                    # coef (B,12)
            pl.BlockSpec((None, 3, row_tile, w), lambda ri, bi: (bi, 0, ri, 0)),  # Offset
            pl.BlockSpec((3, row_tile, w), lambda ri, bi: (0, ri, 0)),            # mean_posmap
        ],
        out_specs=pl.BlockSpec((None, 3, row_tile, w), lambda ri, bi: (bi, 0, ri, 0)),
        compiler_params=pltpu.CompilerParams(
            dimension_semantics=("parallel", "arbitrary")),
        cost_estimate=cost,
    )(coef, offset, mean_posmap)
    return out


def rpfq_reference(offset, q, t, mean_posmap):
    """Pure-JAX mirror of the PyTorch module (permutes + per-batch matmul)."""
    b = offset.shape[0]
    s = _REVERT * S_SCALE
    r = _quaternion_to_rotation(q * Q_SCALE) * s[None]
    r = jnp.transpose(r, (0, 2, 1))
    tt = t * T_SCALE
    pos = offset * OFFSET_SCALE + mean_posmap[None]
    _, _, h, w = pos.shape
    pos = jnp.transpose(pos, (0, 2, 3, 1)).reshape(b, h * w, 3)
    # exact elementwise contraction (K = 3), avoids matmul precision surprises
    pos = (pos[..., :, None] * r[:, None, :, :]).sum(axis=2) + tt[:, None, :]
    pos = jnp.transpose(pos.reshape(b, h, w, 3), (0, 3, 1, 2)) / OUT_DIV
    return pos


if __name__ == "__main__":
    key = jax.random.PRNGKey(0)
    k1, k2, k3, k4 = jax.random.split(key, 4)

    B, H, W = 2, 256, 256  # the module hard-codes 256x256 (reshape to 65536x3)
    offset = jax.random.normal(k1, (B, 3, H, W), dtype=jnp.float32)
    Q = jax.random.normal(k2, (B, 4), dtype=jnp.float32)
    T = jax.random.normal(k3, (B, 3), dtype=jnp.float32)
    # TODO(synk): mean_posmap is an external data asset in the original module;
    # a deterministic stand-in with the same (3, 256, 256) layout is used here.
    mean_posmap = jax.random.normal(k4, (3, H, W), dtype=jnp.float32)

    rpfq = jax.jit(rpfq_forward)  # fuses the tiny coefficient glue into one launch
    out = jax.block_until_ready(rpfq(offset, Q, T, mean_posmap))

    ref = rpfq_reference(offset, Q, T, mean_posmap)
    assert out.shape == (B, 3, H, W)
    assert out.dtype == jnp.float32
    assert bool(jnp.allclose(out, ref, rtol=1e-5, atol=1e-3)), float(
        jnp.max(jnp.abs(out - ref)))

    print("KERNEL_OK")
</pallas_src>

<mosaic_0001>
module attributes {stable_mosaic.version = 11 : i64} {
  func.func @_rpfq_kernel(%arg0: i32, %arg1: i32, %arg2: memref<2x12xf32, #tpu.memory_space<smem>>, %arg3: memref<1x3x64x256xf32, #tpu.memory_space<vmem>>, %arg4: memref<3x64x256xf32, #tpu.memory_space<vmem>>, %arg5: memref<1x3x64x256xf32, #tpu.memory_space<vmem>>) attributes {dimension_semantics = [#tpu.dimension_semantics<parallel>, #tpu.dimension_semantics<arbitrary>], iteration_bounds = array<i64: 4, 2>, scalar_prefetch = 0 : i64, scratch_operands = 0 : i64, tpu.core_type = #tpu.core_type<tc>, window_params = [{transform_indices = @transform_0, window_bounds = array<i64: 2, 12>}, {transform_indices = @transform_1, window_bounds = array<i64: 1, 3, 64, 256>}, {transform_indices = @transform_2, window_bounds = array<i64: 3, 64, 256>}, {transform_indices = @transform_3, window_bounds = array<i64: 1, 3, 64, 256>}]} {
    %c0 = arith.constant 0 : index
    %c0_0 = arith.constant 0 : index
    %c0_1 = arith.constant 0 : index
    %c0_2 = arith.constant 0 : index
    %0 = vector.load %arg3[%c0, %c0_0, %c0_1, %c0_2] : memref<1x3x64x256xf32, #tpu.memory_space<vmem>>, vector<1x1x64x256xf32>
    %1 = vector.shape_cast %0 : vector<1x1x64x256xf32> to vector<64x256xf32>
    %cst = arith.constant 4.000000e+00 : f32
    %2 = vector.broadcast %cst : f32 to vector<64x256xf32>
    %3 = arith.mulf %1, %2 : vector<64x256xf32>
    %c0_3 = arith.constant 0 : index
    %c0_4 = arith.constant 0 : index
    %c0_5 = arith.constant 0 : index
    %4 = vector.load %arg4[%c0_3, %c0_4, %c0_5] : memref<3x64x256xf32, #tpu.memory_space<vmem>>, vector<1x64x256xf32>
    %5 = vector.shape_cast %4 : vector<1x64x256xf32> to vector<64x256xf32>
    %6 = arith.addf %3, %5 : vector<64x256xf32>
    %c0_6 = arith.constant 0 : index
    %c1 = arith.constant 1 : index
    %c0_7 = arith.constant 0 : index
    %c0_8 = arith.constant 0 : index
    %7 = vector.load %arg3[%c0_6, %c1, %c0_7, %c0_8] : memref<1x3x64x256xf32, #tpu.memory_space<vmem>>, vector<1x1x64x256xf32>
    %8 = vector.shape_cast %7 : vector<1x1x64x256xf32> to vector<64x256xf32>
    %cst_9 = arith.constant 4.000000e+00 : f32
    %9 = vector.broadcast %cst_9 : f32 to vector<64x256xf32>
    %10 = arith.mulf %8, %9 : vector<64x256xf32>
    %c1_10 = arith.constant 1 : index
    %c0_11 = arith.constant 0 : index
    %c0_12 = arith.constant 0 : index
    %11 = vector.load %arg4[%c1_10, %c0_11, %c0_12] : memref<3x64x256xf32, #tpu.memory_space<vmem>>, vector<1x64x256xf32>
    %12 = vector.shape_cast %11 : vector<1x64x256xf32> to vector<64x256xf32>
    %13 = arith.addf %10, %12 : vector<64x256xf32>
    %c0_13 = arith.constant 0 : index
    %c2 = arith.constant 2 : index
    %c0_14 = arith.constant 0 : index
    %c0_15 = arith.constant 0 : index
    %14 = vector.load %arg3[%c0_13, %c2, %c0_14, %c0_15] : memref<1x3x64x256xf32, #tpu.memory_space<vmem>>, vector<1x1x64x256xf32>
    %15 = vector.shape_cast %14 : vector<1x1x64x256xf32> to vector<64x256xf32>
    %cst_16 = arith.constant 4.000000e+00 : f32
    %16 = vector.broadcast %cst_16 : f32 to vector<64x256xf32>
    %17 = arith.mulf %15, %16 : vector<64x256xf32>
    %c2_17 = arith.constant 2 : index
    %c0_18 = arith.constant 0 : index
    %c0_19 = arith.constant 0 : index
    %18 = vector.load %arg4[%c2_17, %c0_18, %c0_19] : memref<3x64x256xf32, #tpu.memory_space<vmem>>, vector<1x64x256xf32>
    %19 = vector.shape_cast %18 : vector<1x64x256xf32> to vector<64x256xf32>
    %20 = arith.addf %17, %19 : vector<64x256xf32>
    %21 = arith.index_cast %arg1 : i32 to index
    %c0_20 = arith.constant 0 : index
    %22 = memref.load %arg2[%21, %c0_20] : memref<2x12xf32, #tpu.memory_space<smem>>
    %23 = arith.index_cast %arg1 : i32 to index
    %c1_21 = arith.constant 1 : index
    %24 = memref.load %arg2[%23, %c1_21] : memref<2x12xf32, #tpu.memory_space<smem>>
    %25 = arith.index_cast %arg1 : i32 to index
    %c2_22 = arith.constant 2 : index
    %26 = memref.load %arg2[%25, %c2_22] : memref<2x12xf32, #tpu.memory_space<smem>>
    %27 = arith.index_cast %arg1 : i32 to index
    %c9 = arith.constant 9 : index
    %28 = memref.load %arg2[%27, %c9] : memref<2x12xf32, #tpu.memory_space<smem>>
    %29 = vector.broadcast %22 : f32 to vector<64x256xf32>
    %30 = arith.mulf %29, %6 : vector<64x256xf32>
    %31 = vector.broadcast %24 : f32 to vector<64x256xf32>
    %32 = arith.mulf %31, %13 : vector<64x256xf32>
    %33 = arith.addf %30, %32 : vector<64x256xf32>
    %34 = vector.broadcast %26 : f32 to vector<64x256xf32>
    %35 = arith.mulf %34, %20 : vector<64x256xf32>
    %36 = arith.addf %33, %35 : vector<64x256xf32>
    %37 = vector.broadcast %28 : f32 to vector<64x256xf32>
    %38 = arith.addf %36, %37 : vector<64x256xf32>
    %c0_23 = arith.constant 0 : index
    %c0_24 = arith.constant 0 : index
    %c0_25 = arith.constant 0 : index
    %c0_26 = arith.constant 0 : index
    %39 = vector.load %arg5[%c0_23, %c0_24, %c0_25, %c0_26] : memref<1x3x64x256xf32, #tpu.memory_space<vmem>>, vector<1x1x64x256xf32>
    %40 = vector.shape_cast %39 : vector<1x1x64x256xf32> to vector<64x256xf32>
    %41 = vector.shape_cast %38 : vector<64x256xf32> to vector<1x1x64x256xf32>
    tpu.vector_store %arg5[%c0_23, %c0_24, %c0_25, %c0_26], %41 {strides = array<i32>} : memref<1x3x64x256xf32, #tpu.memory_space<vmem>>, vector<1x1x64x256xf32>,
    %42 = arith.index_cast %arg1 : i32 to index
    %c3 = arith.constant 3 : index
    %43 = memref.load %arg2[%42, %c3] : memref<2x12xf32, #tpu.memory_space<smem>>
    %44 = arith.index_cast %arg1 : i32 to index
    %c4 = arith.constant 4 : index
    %45 = memref.load %arg2[%44, %c4] : memref<2x12xf32, #tpu.memory_space<smem>>
    %46 = arith.index_cast %arg1 : i32 to index
    %c5 = arith.constant 5 : index
    %47 = memref.load %arg2[%46, %c5] : memref<2x12xf32, #tpu.memory_space<smem>>
    %48 = arith.index_cast %arg1 : i32 to index
    %c10 = arith.constant 10 : index
    %49 = memref.load %arg2[%48, %c10] : memref<2x12xf32, #tpu.memory_space<smem>>
    %50 = vector.broadcast %43 : f32 to vector<64x256xf32>
    %51 = arith.mulf %50, %6 : vector<64x256xf32>
    %52 = vector.broadcast %45 : f32 to vector<64x256xf32>
    %53 = arith.mulf %52, %13 : vector<64x256xf32>
    %54 = arith.addf %51, %53 : vector<64x256xf32>
    %55 = vector.broadcast %47 : f32 to vector<64x256xf32>
    %56 = arith.mulf %55, %20 : vector<64x256xf32>
    %57 = arith.addf %54, %56 : vector<64x256xf32>
    %58 = vector.broadcast %49 : f32 to vector<64x256xf32>
    %59 = arith.addf %57, %58 : vector<64x256xf32>
    %c0_27 = arith.constant 0 : index
    %c1_28 = arith.constant 1 : index
    %c0_29 = arith.constant 0 : index
    %c0_30 = arith.constant 0 : index
    %60 = vector.load %arg5[%c0_27, %c1_28, %c0_29, %c0_30] : memref<1x3x64x256xf32, #tpu.memory_space<vmem>>, vector<1x1x64x256xf32>
    %61 = vector.shape_cast %60 : vector<1x1x64x256xf32> to vector<64x256xf32>
    %62 = vector.shape_cast %59 : vector<64x256xf32> to vector<1x1x64x256xf32>
    tpu.vector_store %arg5[%c0_27, %c1_28, %c0_29, %c0_30], %62 {strides = array<i32>} : memref<1x3x64x256xf32, #tpu.memory_space<vmem>>, vector<1x1x64x256xf32>,
    %63 = arith.index_cast %arg1 : i32 to index
    %c6 = arith.constant 6 : index
    %64 = memref.load %arg2[%63, %c6] : memref<2x12xf32, #tpu.memory_space<smem>>
    %65 = arith.index_cast %arg1 : i32 to index
    %c7 = arith.constant 7 : index
    %66 = memref.load %arg2[%65, %c7] : memref<2x12xf32, #tpu.memory_space<smem>>
    %67 = arith.index_cast %arg1 : i32 to index
    %c8 = arith.constant 8 : index
    %68 = memref.load %arg2[%67, %c8] : memref<2x12xf32, #tpu.memory_space<smem>>
    %69 = arith.index_cast %arg1 : i32 to index
    %c11 = arith.constant 11 : index
    %70 = memref.load %arg2[%69, %c11] : memref<2x12xf32, #tpu.memory_space<smem>>
    %71 = vector.broadcast %64 : f32 to vector<64x256xf32>
    %72 = arith.mulf %71, %6 : vector<64x256xf32>
    %73 = vector.broadcast %66 : f32 to vector<64x256xf32>
    %74 = arith.mulf %73, %13 : vector<64x256xf32>
    %75 = arith.addf %72, %74 : vector<64x256xf32>
    %76 = vector.broadcast %68 : f32 to vector<64x256xf32>
    %77 = arith.mulf %76, %20 : vector<64x256xf32>
    %78 = arith.addf %75, %77 : vector<64x256xf32>
    %79 = vector.broadcast %70 : f32 to vector<64x256xf32>
    %80 = arith.addf %78, %79 : vector<64x256xf32>
    %c0_31 = arith.constant 0 : index
    %c2_32 = arith.constant 2 : index
    %c0_33 = arith.constant 0 : index
    %c0_34 = arith.constant 0 : index
    %81 = vector.load %arg5[%c0_31, %c2_32, %c0_33, %c0_34] : memref<1x3x64x256xf32, #tpu.memory_space<vmem>>, vector<1x1x64x256xf32>
    %82 = vector.shape_cast %81 : vector<1x1x64x256xf32> to vector<64x256xf32>
    %83 = vector.shape_cast %80 : vector<64x256xf32> to vector<1x1x64x256xf32>
    tpu.vector_store %arg5[%c0_31, %c2_32, %c0_33, %c0_34], %83 {strides = array<i32>} : memref<1x3x64x256xf32, #tpu.memory_space<vmem>>, vector<1x1x64x256xf32>,
    return
  }
  func.func @transform_0(%arg0: i32, %arg1: i32) -> (i32, i32) {
    %c0_i32 = arith.constant 0 : i32
    %c0_i32_0 = arith.constant 0 : i32
    %c0_i32_1 = arith.constant 0 : i32
    return %c0_i32, %c0_i32_0 : i32, i32
  }
  func.func @transform_1(%arg0: i32, %arg1: i32) -> (i32, i32, i32, i32) {
    %c0_i32 = arith.constant 0 : i32
    %c0_i32_0 = arith.constant 0 : i32
    %c0_i32_1 = arith.constant 0 : i32
    return %arg1, %c0_i32, %arg0, %c0_i32_0 : i32, i32, i32, i32
  }
  func.func @transform_2(%arg0: i32, %arg1: i32) -> (i32, i32, i32) {
    %c0_i32 = arith.constant 0 : i32
    %c0_i32_0 = arith.constant 0 : i32
    %c0_i32_1 = arith.constant 0 : i32
    return %c0_i32, %arg0, %c0_i32_0 : i32, i32, i32
  }
  func.func @transform_3(%arg0: i32, %arg1: i32) -> (i32, i32, i32, i32) {
    %c0_i32 = arith.constant 0 : i32
    %c0_i32_0 = arith.constant 0 : i32
    %c0_i32_1 = arith.constant 0 : i32
    return %arg1, %c0_i32, %arg0, %c0_i32_0 : i32, i32, i32, i32
  }
}

</mosaic_0001>

<bundles_post_ra>
// kernel: rpfq_forward.1
= control target key start
LH: loop header
LB: loop body
LE: loop exit
PB: predicated region body
PF: predicated region fallthrough
CT: control target
= control target key end

     0   :  { %s2423_s0 = inlined_call_operand.vmem [shape: f32[2,12], index: 0, kind: input, shape index: {}]   ;;  %s2424_s1 = inlined_call_operand.hbm [shape: f32[2,3,256,256], index: 1, kind: input, shape index: {}]   ;;  %s2425_s2 = inlined_call_operand.hbm [shape: f32[3,256,256], index: 2, kind: input, shape index: {}]   ;;  %s2426_s3 = inlined_call_operand.hbm [shape: f32[2,3,256,256], index: 3, kind: output, shape index: {}]  }
   0x1   :  { %2458 = sst [smem:[#allocation41_spill]] %s2423_s0 }
   0x2   :  { %8 = vsyncpa [#allocation5], 0 }
   0x3   :  { %9 = vsyncpa [#allocation3], 0 }
   0x4   :  { %11 = vsyncpa [#allocation3 + $0x1], 0 }
   0x5   :  { %12 = vsyncpa [#allocation8], 0 }
   0x6   :  { %14 = vsyncpa [#allocation8 + $0x1], 0 }
   0x7   :  { %15 = vsyncpa [#allocation4], 0 }
   0x8   :  { %17 = vsyncpa [#allocation4 + $0x1], 0  ;;  %s1494_s12 = smov 0   ;;  %s1496_s13 = smov 0  }
   0x9   :  { %s1498_s14 = smov 0   ;;  %s1500_s15 = smov 0  }
   0xa   :  { %s1502_s16 = smov 0   ;;  %s1504_s17 = smov 0  }
   0xb   :  { %s1506_s18 = smov 0   ;;  %s1508_s19 = smov 0  }
   0xc   :  { %s1510_s20 = smov 0   ;;  %s1512_s21 = smov 0  }
   0xd   :  { %s1514_s22 = smov 0  }
   0xe LB: > { %2459 = sst [smem:[#allocation22_spill]] %s1424_s15  ;;  %s1057_s23 = sadd.s32 4294967295, %s1452_s22   ;;  %s1452_s22 = sphi %s1514_s22, %s23_s22   ;;  %s1448_s21 = sphi %s1512_s21, %s2521_s21   ;;  %s1444_s20 = sphi %s1510_s20, %s2513_s20   ;;  %s1440_s19 = sphi %s1508_s19, %s2520_s19   ;;  %s1436_s18 = sphi %s1506_s18, %s2512_s18   ;;  %s1432_s17 = sphi %s1504_s17, %s2511_s17   ;;  %s1428_s16 = sphi %s1502_s16, %s2519_s16   ;;  %s1424_s15 = sphi %s1500_s15, %s2518_s15   ;;  %s1420_s14 = sphi %s1498_s14, %s2517_s14   ;;  %s1416_s13 = sphi %s1496_s13, %s2516_s13   ;;  %s1412_s12 = sphi %s1494_s12, %s2515_s12  }
   0xf   : > { %2460 = sst [smem:[#allocation23_spill]] %s1432_s17  ;;  %s1058_s24 = sadd.s32 4294967294, %s1452_s22  }
  0x10   : > { %2461 = sst [smem:[#allocation24_spill]] %s1444_s20  ;;  %s32_s25 = sadd.s32 1, %s1444_s20 }
  0x11   : > { %2462 = sst [smem:[#allocation25_spill]] %s1452_s22  ;;  %s35_s26 = sadd.s32 1, %s1448_s21 }
  0x12   : > { %p33_p0 = scmp.ge.s32.totalorder %s32_s25, 2  ;;  %s65_s27 = sadd.s32 1, %s1432_s17 }
  0x13   : > { %p72_p1 = scmp.ne.s32.totalorder %s1432_s17, %s1428_s16  ;;  %p73_p2 = scmp.eq.s32.totalorder %s1452_s22, 0 }
  0x14   : > { %s2523_s25 = smov (%p33_p0, %s32_s25), 0  ;;  %s2525_s26 = smov (!%p33_p0, %s35_s26), %s1448_s21 }
  0x15   : > { %2463 = sst [smem:[#allocation26_spill]] %s2523_s25  ;;  %s60_s28 = ssub.s32 %s1444_s20, %s2523_s25 }
  0x16   : > { %p1567_p3 = por %p73_p2, %p72_p1  ;;  %p37_p4 = scmp.ge.s32.totalorder %s2525_s26, 4 }
  0x17   : > { %p2427_p5 = scmp.ne.s32.totalorder %s1428_s16, %s1424_s15  ;;  %p1573_p6 = scmp.eq.s32.totalorder %s1057_s23, 0 }
  0x18   : > { %s91_s4 = sadd.s32 1, %s1420_s14  ;;  %s2527_s26 = smov (%p37_p4, %s2525_s26), 0 }
  0x19   : > { %2466 = sst [smem:[#allocation27_spill]] %s2527_s26  ;;  %p1585_p7 = por %p1573_p6, %p2427_p5 }
  0x1a   : > { %p98_p8 = scmp.ne.s32.totalorder %s1420_s14, %s1416_s13  ;;  %s61_s6 = ssub.s32 %s1448_s21, %s2527_s26 }
  0x1b   : > { %s2467_s5 = scalar_select %p1585_p7, 1, 0 }
  0x1c   : > { %p104_p9 = scmp.ne.s32.totalorder %s1416_s13, %s1412_s12  ;;  %s62_s7 = sor.u32 %s61_s6, %s60_s28 }
  0x1d   : > { %p89_p10 = scmp.eq.s32.totalorder %s61_s6, 0  ;;  %p63_p11 = scmp.eq.s32.totalorder %s62_s7, 0 }
  0x1e   : > { %p1597_p12 = por %p98_p8, %p73_p2  ;;  %p1609_p13 = por %p104_p9, %p1573_p6 }
  0x1f   : > { %s1602_s9 = scalar_select %p89_p10, %s1420_s14, %s91_s4  }
  0x20   : > { %s2468_s8 = scalar_select %p1597_p12, 1, 0 }
  0x21   : > { %2469 = sst [smem:[#allocation28_spill]] %s1602_s9  ;;  %p130_p0 = scmp.eq.s32.totalorder %s1057_s23, 7 }
  0x22   : > { %s1605_s10 = scalar_select %p63_p11, %s1432_s17, %s65_s27  }
  0x23   : > { %s2471_s11 = scalar_select %p1609_p13, 1, 0 }
  0x24   : > { %2470 = sst [smem:[#allocation29_spill]] %s1605_s10  ;;  %p136_p4 = scmp.eq.s32.totalorder %s1058_s24, 7 }
  0x25   : > { %p1059_p5 = scmp.ge.s32.totalorder %s1452_s22, 1  ;;  %p1617_p7 = por %p130_p0, %p72_p1 }
  0x26   : > { %p143_p2 = scmp.lt.s32.totalorder %s1452_s22, 9  ;;  %p2473_p8 = scmp.ne.s32.totalorder %s1428_s16, %s1424_s15 }
  0x27   : > { %s2472_s12 = scalar_select %p1617_p7, 1, 0 }
  0x28   : > { %p1625_p12 = por %p136_p4, %p2473_p8  ;;  %p1629_p10 = pnand %p1059_p5, %p143_p2 }
  0x29   : > { %s2477_s0 = sld [smem:[#allocation41_spill]] }
  0x2a   : > { %s2474_s28 = scalar_select %p1625_p12, 1, 0 }
  0x2b   : > { %p1216_p1 = pneg %p1629_p10 }
  0x2c   : > { %2475 = sst [smem:[#allocation30_spill]] %s2474_s28 }
  0x2d   : > { %p1217_p9 = pnand %p1216_p1, %p1573_p6 }
  0x2f   : > { %s156_s23 = sshll.u32 %s2477_s0, 4  ;;  %p1337_p0 = pneg %p1217_p9  ;;  %s157_s23 = int_to_ptr.vmem [resolvable:$true] %s156_s23 }
  0x30   : > { %s1335_s24 = scalar_lea.vmem %s157_s23, 32  ;;  %p1343_p12 = scmp.lt.s32.totalorder %s157_s23, %s157_s23 }
  0x31   : > { %p1336_p11 = scmp.ne.s32.totalorder %s157_s23, %s1335_s24  ;;  %p1344_p5 = scmp.lt.s32.totalorder %s1335_s24, %s1335_s24 }
  0x33   : > { %p1338_p4 = pnand %p1337_p0, %p1336_p11  ;;  %p1345_p2 = por %p1344_p5, %p1343_p12 }
  0x35   : > { %p1339_p8 = pneg %p1338_p4 }
  0x37   : > { %p1346_p7 = pnand %p1345_p2, %p1339_p8 }
  0x39   : > { %1349 = shalt.err (!%p1346_p7)
}
  0x3a   : > { %s1454_s7 = smov [#allocation2]   ;;  %p1061_p13 = scmp.ge.s32.totalorder %s1452_s22, 8 }
  0x3b   : > { %1219 = dma.vmem_to_smem (!%p1217_p9), %s157_s23, 32, %s1454_s7, [#allocation5]  }
  0x3c   : > { %163 = sbr.rel (%p1061_p13) target bundleno = 99 (0x63), region = 20 }
  0x43   : > { %s167_s4 = sand.u32 1, %s1432_s17   ;;  %s1176_s0 = sshll.u32 %s1448_s21, 4 }
  0x44   : > { %s1180_s6 = smul.u32 384, %s167_s4  ;;  %s1455_s26 = smov 8192  }
  0x45   : > { %s1181_s24 = smul.u32 192, %s1444_s20  ;;  %1189 = sst [smem:[#allocation11]] (%p1567_p3), %s1455_s26 }
  0x46   : > { %s171_s7 = scalar_lea.vmem [#allocation6], %s1180_s6  ;;  %s1456_s9 = smov 2048  }
  0x47   : > { %s178_s23 = sadd.s32 %s1181_s24, %s1176_s0  ;;  %s193_s25 = sshll.u32 %s171_s7, 4  ;;  %s194_s25 = int_to_ptr.vmem [resolvable:$true] %s193_s25 }
  0x48   : > { %s1188_s10 = scalar_select %p1567_p3, [#allocation0], [#allocation16] }
  0x49   : > { %1190 = sst [smem:[#allocation11 + $0x1]] (%p1567_p3), %s1456_s9  ;;  %s1457_s17 = smov 8  }
  0x4a   : > { %s185_s28 = sld [smem:[%s1188_s10]]   ;;  %s1064_s15 = sshll.u32 %s178_s23, 7 }
  0x4b   : > { %1191 = sst [smem:[#allocation11 + $0x2]] (%p1567_p3), %s1457_s17  ;;  %s1458_s22 = smov 256  }
  0x4c   : > { %1192 = sst [smem:[#allocation11 + $0x3]] (%p1567_p3), %s1458_s22  ;;  %s1459_s0 = smov 16  }
  0x4d   : > { %1193 = sst [smem:[#allocation11 + $0x4]] (%p1567_p3), %s1458_s22  ;;  %s180_s24 = scalar_lea.hbm %s2424_s1, %s1064_s15 }
  0x4e   : > { %1194 = sst [smem:[#allocation11 + $0x5]] (%p1567_p3), %s1459_s0  ;;  %s168_s10 = scalar_lea.sflag [#allocation3], %s167_s4 }
  0x4f   : > { %s1460_s20 = smov [#allocation10]  }
  0x50   : > { %s1065_s9 = sshll.u32 %s185_s28, 26 }
  0x51   : > { %s1066_s7 = sadd.s32 134217728, %s1065_s9 }
  0x52   : > { %1195 = dma.general (%p1567_p3), %s180_s24, 6144, %s194_s25, %s168_s10, %s1460_s20, [#allocation11], %s1066_s7, 0  }
  0x53   : > { %s216_s17 = sand.u32 1, %s1420_s14   ;;  %s1178_s23 = sshll.u32 %s1448_s21, 11 }
  0x54   : > { %s1182_s22 = smul.u32 384, %s216_s17  ;;  %s1461_s0 = smov 8192  }
  0x55   : > { %p2478_p7 = scmp.ne.s32.totalorder %s2468_s8, 0  ;;  %s227_s20 = scalar_lea.hbm %s2425_s2, %s1178_s23 }
  0x56   : > { %s220_s4 = scalar_lea.vmem [#allocation7], %s1182_s22  ;;  %s1462_s6 = smov 2048  }
  0x57   : > { %1197 = sst [smem:[#allocation13]] (%p2478_p7), %s1461_s0  ;;  %s240_s26 = sshll.u32 %s220_s4, 4  ;;  %s241_s26 = int_to_ptr.vmem [resolvable:$true] %s240_s26 }
  0x58   : > { %s1196_s15 = scalar_select %p2478_p7, [#allocation0], [#allocation17] }
  0x59   : > { %1198 = sst [smem:[#allocation13 + $0x1]] (%p2478_p7), %s1462_s6  ;;  %s1463_s24 = smov 8  }
  0x5a   : > { %s232_s25 = sld [smem:[%s1196_s15]]   ;;  %s1464_s9 = smov 256  }
  0x5b   : > { %1199 = sst [smem:[#allocation13 + $0x2]] (%p2478_p7), %s1463_s24  ;;  %s1465_s7 = smov 16  }
  0x5c   : > { %1200 = sst [smem:[#allocation13 + $0x3]] (%p2478_p7), %s1464_s9  ;;  %s217_s22 = scalar_lea.sflag [#allocation8], %s216_s17 }
  0x5d   : > { %1201 = sst [smem:[#allocation13 + $0x4]] (%p2478_p7), %s1464_s9  ;;  %s1466_s0 = smov [#allocation12]  }
  0x5e   : > { %1202 = sst [smem:[#allocation13 + $0x5]] (%p2478_p7), %s1465_s7 }
  0x60   : > { %s1070_s10 = sshll.u32 %s232_s25, 26 }
  0x61   : > { %s1071_s23 = sadd.s32 134217728, %s1070_s10 }
  0x62   : > { %1203 = dma.general (%p2478_p7), %s227_s20, 6144, %s241_s26, %s217_s22, %s1466_s0, [#allocation13], %s1071_s23, 0  }
  0x63 PF: > { %265 = sbr.rel (%p1629_p10) target bundleno = 239 (0xef), region = 32 }
  0x6a   : > { %1395 = dma.done.wait (%p1573_p6), [#allocation5], 32  }
  0x6b   : > { %1397 = vsyncadd (%p1573_p6), [#allocation5], 4294967264  ;;  %s1691_s15 = sand.u32 1, %s1428_s16   ;;  %p2479_p3 = scmp.ne.s32.totalorder %s2467_s5, 0 }
  0x6c   : > { %s1183_s17 = smul.u32 384, %s1691_s15  ;;  %s272_s8 = scalar_lea.sflag [#allocation3], %s1691_s15 }
  0x6e   : > { %s1697_s28 = scalar_lea.vmem [#allocation6], %s1183_s17 }
  0x6f   : > { %1399 = dma.done.wait (%p2479_p3), %s272_s8, 6144  }
  0x70   : > { %1401 = vsyncadd (%p2479_p3), %s272_s8, 4294961152  ;;  %s280_s30 = sand.u32 1, %s1416_s13   ;;  %p2480_p6 = scmp.ne.s32.totalorder %s2471_s11, 0 }
  0x71   : > { %s1184_s27 = smul.u32 384, %s280_s30  ;;  %s281_s29 = scalar_lea.sflag [#allocation8], %s280_s30 }
  0x73   : > { %s1704_s20 = scalar_lea.vmem [#allocation7], %s1184_s27 }
  0x74   : > { %1403 = dma.done.wait (%p2480_p6), %s281_s29, 6144  }
  0x75   : > { %1405 = vsyncadd (%p2480_p6), %s281_s29, 4294961152 }
  0x76   : > { %289 = sfence }
  0x77   : > { %v316_v0 = vld [vmem:[%s1697_s28] sm:$0xff]  ;;  %s1714_s5 = sshll.u32 %s1436_s18, 7  ;;  %v317_v9 = vld [vmem:[%s1697_s28 + $0x8] sm:$0xff]  ;;  %v318_v19 = vld [vmem:[%s1697_s28 + $0x10] sm:$0xff]  ;;  %s1839_s7 = scalar_lea.vmem [#allocation9], %s1183_s17 }
  0x78   : > { %v348_v1 = vld [vmem:[%s1704_s20] sm:$0xff]  ;;  %v332_v3 = vmul.f32 4.0, %v316_v0  ;;  %s1720_s11 = sld [smem:[#allocation2 + %s1714_s5]]  ;;  %s514_s25 = sadd.s32 1, %s1714_s5  ;;  %v349_v10 = vld [vmem:[%s1704_s20 + $0x8] sm:$0xff]  ;;  %v333_v12 = vmul.f32 4.0, %v317_v9 }
  0x79   : > { %v1074_v2 = vld [vmem:[%s1697_s28 + $0x80] sm:$0xff]  ;;  %s516_s4 = sadd.s32 2, %s1714_s5  ;;  %v1075_v11 = vld [vmem:[%s1697_s28 + $0x88] sm:$0xff]  ;;  %s1727_s26 = sld [smem:[#allocation2 + %s514_s25]]  ;;  %v350_v20 = vld [vmem:[%s1704_s20 + $0x10] sm:$0xff]  ;;  %v334_v24 = vmul.f32 4.0, %v318_v19 }
  0x7a   : > { %v397_v4 = vmul.f32 4.0, %v1074_v2  ;;  %v1090_v5 = vld [vmem:[%s1704_s20 + $0x80] sm:$0xff]  ;;  %s1729_s6 = sld [smem:[#allocation2 + %s516_s4]]  ;;  %v398_v13 = vmul.f32 4.0, %v1075_v11  ;;  %v1091_v14 = vld [vmem:[%s1704_s20 + $0x88] sm:$0xff]  ;;  %v1733_v16 = vadd.f32 %v348_v1, %v332_v3  ;;  %s518_s24 = sadd.s32 9, %s1714_s5  ;;  %v1745_v23 = vadd.f32 %v349_v10, %v333_v12 }
  0x7b   : > { %v1106_v6 = vld [vmem:[%s1697_s28 + $0x100] sm:$0xff]  ;;  %v1107_v15 = vld [vmem:[%s1697_s28 + $0x108] sm:$0xff]  ;;  %s1743_s9 = sld [smem:[#allocation2 + %s518_s24]]  ;;  %v1076_v25 = vld [vmem:[%s1697_s28 + $0x90] sm:$0xff]  ;;  %v1760_v36 = vadd.f32 %v350_v20, %v334_v24  ;;  %s636_s10 = sadd.s32 3, %s1714_s5 }
  0x7c   : > { %v1122_v7 = vld [vmem:[%s1704_s20 + $0x100] sm:$0xff]  ;;  %v463_v8 = vmul.f32 4.0, %v1106_v6  ;;  %v464_v17 = vmul.f32 4.0, %v1107_v15  ;;  %v1123_v18 = vld [vmem:[%s1704_s20 + $0x108] sm:$0xff]  ;;  %v1739_v21 = vadd.f32 %v1090_v5, %v397_v4  ;;  %v1092_v26 = vld [vmem:[%s1704_s20 + $0x90] sm:$0xff]  ;;  %v1750_v28 = vadd.f32 %v1091_v14, %v398_v13  ;;  %s638_s23 = sadd.s32 4, %s1714_s5 }
  0x7d   : > { %v1108_v27 = vld [vmem:[%s1697_s28 + $0x110] sm:$0xff]  ;;  %v399_v30 = vmul.f32 4.0, %v1076_v25  ;;  %v319_v33 = vld [vmem:[%s1697_s28 + $0x18] sm:$0xff]  ;;  %v320_v53 = vld [vmem:[%s1697_s28 + $0x20] sm:$0xff]  ;;  %s640_s22 = sadd.s32 5, %s1714_s5  ;;  %s2005_s0 = sld [smem:[#allocation2 + %s636_s10]] }
  0x7e   : > { %v1741_v22 = vadd.f32 %v1122_v7, %v463_v8  ;;  %v1752_v29 = vadd.f32 %v1123_v18, %v464_v17  ;;  %v465_v31 = vmul.f32 4.0, %v1108_v27  ;;  %v1124_v32 = vld [vmem:[%s1704_s20 + $0x110] sm:$0xff]  ;;  %v351_v34 = vld [vmem:[%s1704_s20 + $0x18] sm:$0xff]  ;;  %v1758_v35 = vstv %s1720_s11  ;;  %v1078_v54 = vld [vmem:[%s1697_s28 + $0xa0] sm:$0xff]  ;;  %s2007_s17 = sld [smem:[#allocation2 + %s638_s23]]  ;;  %s642_s8 = sadd.s32 10, %s1714_s5 }
  0x7f   : > { %v335_v37 = vmul.f32 4.0, %v319_v33  ;;  %v521_v38 = vmul.f32 %v1758_v35, %v1733_v16  ;;  %v522_v39 = vmul.f32 %v1758_v35, %v1745_v23  ;;  %v1766_v40 = vadd.f32 %v1092_v26, %v399_v30  ;;  %v1077_v42 = vld [vmem:[%s1697_s28 + $0x98] sm:$0xff]  ;;  %v1110_v60 = vld [vmem:[%s1697_s28 + $0x120] sm:$0xff]  ;;  %v321_v17 = vld [vmem:[%s1697_s28 + $0x28] sm:$0xff]  ;;  %s2019_s30 = sld [smem:[#allocation2 + %s640_s22]]  ;;  %s763_s29 = sadd.s32 7, %s1714_s5 }
  0x80   : > { %v1768_v41 = vadd.f32 %v1124_v32, %v465_v31  ;;  %v1772_v43 = vstv %s1727_s26  ;;  %v1775_v44 = vstv %s1729_s6  ;;  %v523_v45 = vmul.f32 %v1758_v35, %v1760_v36  ;;  %v1109_v47 = vld [vmem:[%s1697_s28 + $0x118] sm:$0xff]  ;;  %v352_v1 = vld [vmem:[%s1704_s20 + $0x20] sm:$0xff]  ;;  %s2034_s27 = sld [smem:[#allocation2 + %s642_s8]]  ;;  %s767_s25 = sadd.s32 11, %s1714_s5 }
  0x81   : > { %v1779_v46 = vadd.f32 %v351_v34, %v335_v37  ;;  %v538_v48 = vmul.f32 %v1772_v43, %v1739_v21  ;;  %v571_v49 = vmul.f32 %v1775_v44, %v1741_v22  ;;  %v539_v50 = vmul.f32 %v1772_v43, %v1750_v28  ;;  %v1093_v52 = vld [vmem:[%s1704_s20 + $0x98] sm:$0xff]  ;;  %v1094_v2 = vld [vmem:[%s1704_s20 + $0xa0] sm:$0xff]  ;;  %v1079_v18 = vld [vmem:[%s1697_s28 + $0xa8] sm:$0xff]  ;;  %s2175_s4 = sld [smem:[#allocation2 + %s763_s29]]  ;;  %s887_s6 = scalar_lea.sflag [#allocation4], %s1691_s15 }
  0x82   : > { %v572_v51 = vmul.f32 %v1775_v44, %v1752_v29  ;;  %v1794_v55 = vstv %s1743_s9  ;;  %v540_v56 = vmul.f32 %v1772_v43, %v1766_v40  ;;  %v573_v57 = vmul.f32 %v1775_v44, %v1768_v41  ;;  %v1125_v59 = vld [vmem:[%s1704_s20 + $0x118] sm:$0xff]  ;;  %v1126_v7 = vld [vmem:[%s1704_s20 + $0x120] sm:$0xff]  ;;  %v1111_v19 = vld [vmem:[%s1697_s28 + $0x128] sm:$0xff]  ;;  %s2190_s26 = sld [smem:[#allocation2 + %s767_s25]] }
  0x83   : > { %v400_v58 = vmul.f32 4.0, %v1077_v42  ;;  %v554_v61 = vadd.f32 %v538_v48, %v521_v38  ;;  %v555_v62 = vadd.f32 %v539_v50, %v522_v39  ;;  %v466_v63 = vmul.f32 4.0, %v1109_v47  ;;  %v353_v27 = vld [vmem:[%s1704_s20 + $0x28] sm:$0xff]  ;;  %v322_v30 = vld [vmem:[%s1697_s28 + $0x30] sm:$0xff] }
  0x84   : > { %v524_v0 = vmul.f32 %v1758_v35, %v1779_v46  ;;  %v556_v3 = vadd.f32 %v540_v56, %v523_v45  ;;  %v336_v5 = vmul.f32 4.0, %v320_v53  ;;  %v401_v6 = vmul.f32 4.0, %v1078_v54  ;;  %v1080_v31 = vld [vmem:[%s1697_s28 + $0xb0] sm:$0xff]  ;;  %v1095_v38 = vld [vmem:[%s1704_s20 + $0xa8] sm:$0xff] }
  0x85   : > { %v1806_v4 = vadd.f32 %v1093_v52, %v400_v58  ;;  %v587_v8 = vadd.f32 %v571_v49, %v554_v61  ;;  %v588_v9 = vadd.f32 %v572_v51, %v555_v62  ;;  %v1809_v10 = vadd.f32 %v1125_v59, %v466_v63  ;;  %v1127_v39 = vld [vmem:[%s1704_s20 + $0x128] sm:$0xff]  ;;  %v1112_v42 = vld [vmem:[%s1697_s28 + $0x130] sm:$0xff]  ;;  %v323_v62 = vld [vmem:[%s1697_s28 + $0x38] sm:$0xff] }
  0x86   : > { %v467_v11 = vmul.f32 4.0, %v1110_v60  ;;  %v589_v12 = vadd.f32 %v573_v57, %v556_v3  ;;  %v1813_v14 = vadd.f32 %v352_v1, %v336_v5  ;;  %v1815_v15 = vadd.f32 %v1094_v2, %v401_v6  ;;  %v354_v50 = vld [vmem:[%s1704_s20 + $0x30] sm:$0xff]  ;;  %v1081_v3 = vld [vmem:[%s1697_s28 + $0xb8] sm:$0xff] }
  0x87   : > { %2481 = vst [vmem:[#allocation31_spill] sm:$0xff] %v1809_v10  ;;  %v541_v13 = vmul.f32 %v1772_v43, %v1806_v4  ;;  %v604_v20 = vadd.f32 %v1794_v55, %v587_v8  ;;  %v605_v24 = vadd.f32 %v1794_v55, %v588_v9  ;;  %v574_v25 = vmul.f32 %v1775_v44, %v1809_v10  ;;  %v1096_v51 = vld [vmem:[%s1704_s20 + $0xb0] sm:$0xff]  ;;  %v1113_v5 = vld [vmem:[%s1697_s28 + $0x138] sm:$0xff] }
  0x88   : > { %v1824_v26 = vadd.f32 %v1126_v7, %v467_v11  ;;  %v606_v32 = vadd.f32 %v1794_v55, %v589_v12  ;;  %v525_v34 = vmul.f32 %v1758_v35, %v1813_v14  ;;  %v542_v37 = vmul.f32 %v1772_v43, %v1815_v15  ;;  %v1128_v57 = vld [vmem:[%s1704_s20 + $0x130] sm:$0xff]  ;;  %v355_v11 = vld [vmem:[%s1704_s20 + $0x38] sm:$0xff]  ;;  %v324_v12 = vld [vmem:[%s1697_s28 + $0x40] sm:$0xff] }
  0x89   : > { %v557_v33 = vadd.f32 %v541_v13, %v524_v0  ;;  %620 = vst [vmem:[%s1839_s7] sm:$0xff] %v604_v20  ;;  %621 = vst [vmem:[%s1839_s7 + $0x8] sm:$0xff] %v605_v24  ;;  %v337_v47 = vmul.f32 4.0, %v321_v17  ;;  %v402_v48 = vmul.f32 4.0, %v1079_v18  ;;  %v468_v49 = vmul.f32 4.0, %v1111_v19  ;;  %v1082_v13 = vld [vmem:[%s1697_s28 + $0xc0] sm:$0xff]  ;;  %v1097_v24 = vld [vmem:[%s1704_s20 + $0xb8] sm:$0xff] }
  0x8a   : > { %v575_v45 = vmul.f32 %v1775_v44, %v1824_v26  ;;  %622 = vst [vmem:[%s1839_s7 + $0x10] sm:$0xff] %v606_v32  ;;  %v558_v53 = vadd.f32 %v542_v37, %v525_v34  ;;  %v338_v54 = vmul.f32 4.0, %v322_v30  ;;  %v403_v56 = vmul.f32 4.0, %v1080_v31  ;;  %v356_v34 = vld [vmem:[%s1704_s20 + $0x40] sm:$0xff] }
  0x8b   : > { %v590_v52 = vadd.f32 %v574_v25, %v557_v33  ;;  %v1849_v58 = vadd.f32 %v353_v27, %v337_v47  ;;  %v1851_v59 = vadd.f32 %v1095_v38, %v402_v48  ;;  %v1853_v60 = vadd.f32 %v1127_v39, %v468_v49  ;;  %v1129_v25 = vld [vmem:[%s1704_s20 + $0x138] sm:$0xff]  ;;  %v1114_v27 = vld [vmem:[%s1697_s28 + $0x140] sm:$0xff] }
  0x8c   : > { %v469_v61 = vmul.f32 4.0, %v1112_v42  ;;  %v591_v0 = vadd.f32 %v575_v45, %v558_v53  ;;  %v1857_v1 = vadd.f32 %v354_v50, %v338_v54  ;;  %v1859_v2 = vadd.f32 %v1096_v51, %v403_v56  ;;  %v1098_v37 = vld [vmem:[%s1704_s20 + $0xc0] sm:$0xff] }
  0x8d   : > { %v607_v63 = vadd.f32 %v1794_v55, %v590_v52  ;;  %v526_v6 = vmul.f32 %v1758_v35, %v1849_v58  ;;  %v543_v7 = vmul.f32 %v1772_v43, %v1851_v59  ;;  %v576_v8 = vmul.f32 %v1775_v44, %v1853_v60  ;;  %v1130_v47 = vld [vmem:[%s1704_s20 + $0x140] sm:$0xff]  ;;  %v325_v52 = vld [vmem:[%s1697_s28 + $0x48] sm:$0xff] }
  0x8e   : > { %v1869_v9 = vadd.f32 %v1128_v57, %v469_v61  ;;  %v608_v17 = vadd.f32 %v1794_v55, %v591_v0  ;;  %v527_v18 = vmul.f32 %v1758_v35, %v1857_v1  ;;  %v544_v19 = vmul.f32 %v1772_v43, %v1859_v2  ;;  %v1083_v61 = vld [vmem:[%s1697_s28 + $0xc8] sm:$0xff] }
  0x8f   : > { %623 = vst [vmem:[%s1839_s7 + $0x18] sm:$0xff] %v607_v63  ;;  %v339_v20 = vmul.f32 4.0, %v323_v62  ;;  %v559_v30 = vadd.f32 %v543_v7, %v526_v6  ;;  %v404_v32 = vmul.f32 4.0, %v1081_v3  ;;  %v470_v33 = vmul.f32 4.0, %v1113_v5  ;;  %v1115_v62 = vld [vmem:[%s1697_s28 + $0x148] sm:$0xff]  ;;  %v326_v7 = vld [vmem:[%s1697_s28 + $0x50] sm:$0xff] }
  0x90   : > { %v577_v31 = vmul.f32 %v1775_v44, %v1869_v9  ;;  %624 = vst [vmem:[%s1839_s7 + $0x20] sm:$0xff] %v608_v17  ;;  %v560_v38 = vadd.f32 %v544_v19, %v527_v18  ;;  %v340_v42 = vmul.f32 4.0, %v324_v12  ;;  %v405_v45 = vmul.f32 4.0, %v1082_v13  ;;  %v357_v6 = vld [vmem:[%s1704_s20 + $0x48] sm:$0xff] }
  0x91   : > { %v1888_v39 = vadd.f32 %v355_v11, %v339_v20  ;;  %v592_v48 = vadd.f32 %v576_v8, %v559_v30  ;;  %v1891_v49 = vadd.f32 %v1097_v24, %v404_v32  ;;  %v1893_v50 = vadd.f32 %v1129_v25, %v470_v33  ;;  %v1084_v8 = vld [vmem:[%s1697_s28 + $0xd0] sm:$0xff]  ;;  %v1099_v18 = vld [vmem:[%s1704_s20 + $0xc8] sm:$0xff] }
  0x92   : > { %v471_v51 = vmul.f32 4.0, %v1114_v27  ;;  %v593_v53 = vadd.f32 %v577_v31, %v560_v38  ;;  %v1898_v56 = vadd.f32 %v356_v34, %v340_v42  ;;  %v1900_v57 = vadd.f32 %v1098_v37, %v405_v45  ;;  %v1131_v19 = vld [vmem:[%s1704_s20 + $0x148] sm:$0xff]  ;;  %v1116_v20 = vld [vmem:[%s1697_s28 + $0x150] sm:$0xff] }
  0x93   : > { %v528_v54 = vmul.f32 %v1758_v35, %v1888_v39  ;;  %v609_v63 = vadd.f32 %v1794_v55, %v592_v48  ;;  %v545_v0 = vmul.f32 %v1772_v43, %v1891_v49  ;;  %v578_v3 = vmul.f32 %v1775_v44, %v1893_v50  ;;  %v358_v31 = vld [vmem:[%s1704_s20 + $0x50] sm:$0xff] }
  0x94   : > { %v1909_v5 = vadd.f32 %v1130_v47, %v471_v51  ;;  %v610_v11 = vadd.f32 %v1794_v55, %v593_v53  ;;  %v529_v12 = vmul.f32 %v1758_v35, %v1898_v56  ;;  %v546_v13 = vmul.f32 %v1772_v43, %v1900_v57  ;;  %v1100_v32 = vld [vmem:[%s1704_s20 + $0xd0] sm:$0xff] }
  0x95   : > { %v341_v17 = vmul.f32 4.0, %v325_v52  ;;  %625 = vst [vmem:[%s1839_s7 + $0x28] sm:$0xff] %v609_v63  ;;  %v561_v24 = vadd.f32 %v545_v0, %v528_v54  ;;  %v406_v27 = vmul.f32 4.0, %v1083_v61  ;;  %v472_v30 = vmul.f32 4.0, %v1115_v62  ;;  %v1132_v42 = vld [vmem:[%s1704_s20 + $0x150] sm:$0xff]  ;;  %v327_v52 = vld [vmem:[%s1697_s28 + $0x58] sm:$0xff] }
  0x96   : > { %v579_v25 = vmul.f32 %v1775_v44, %v1909_v5  ;;  %626 = vst [vmem:[%s1839_s7 + $0x30] sm:$0xff] %v610_v11  ;;  %v562_v33 = vadd.f32 %v546_v13, %v529_v12  ;;  %v342_v37 = vmul.f32 4.0, %v326_v7  ;;  %v407_v38 = vmul.f32 4.0, %v1084_v8  ;;  %v1085_v63 = vld [vmem:[%s1697_s28 + $0xd8] sm:$0xff]  ;;  %v328_v12 = vld [vmem:[%s1697_s28 + $0x60] sm:$0xff] }
  0x97   : > { %v1928_v34 = vadd.f32 %v357_v6, %v341_v17  ;;  %v594_v45 = vadd.f32 %v578_v3, %v561_v24  ;;  %v1931_v47 = vadd.f32 %v1099_v18, %v406_v27  ;;  %v1933_v48 = vadd.f32 %v1131_v19, %v472_v30  ;;  %v1117_v0 = vld [vmem:[%s1697_s28 + $0x158] sm:$0xff]  ;;  %v1086_v13 = vld [vmem:[%s1697_s28 + $0xe0] sm:$0xff] }
  0x98   : > { %v473_v51 = vmul.f32 4.0, %v1116_v20  ;;  %v595_v53 = vadd.f32 %v579_v25, %v562_v33  ;;  %v1938_v61 = vadd.f32 %v358_v31, %v342_v37  ;;  %v1940_v62 = vadd.f32 %v1100_v32, %v407_v38  ;;  %v359_v11 = vld [vmem:[%s1704_s20 + $0x58] sm:$0xff]  ;;  %v1118_v27 = vld [vmem:[%s1697_s28 + $0x160] sm:$0xff] }
  0x99   : > { %v530_v54 = vmul.f32 %v1758_v35, %v1928_v34  ;;  %v611_v3 = vadd.f32 %v1794_v55, %v594_v45  ;;  %v547_v6 = vmul.f32 %v1772_v43, %v1931_v47  ;;  %v580_v7 = vmul.f32 %v1775_v44, %v1933_v48  ;;  %v1101_v24 = vld [vmem:[%s1704_s20 + $0xd8] sm:$0xff]  ;;  %v360_v37 = vld [vmem:[%s1704_s20 + $0x60] sm:$0xff] }
  0x9a   : > { %v1949_v8 = vadd.f32 %v1132_v42, %v473_v51  ;;  %v612_v17 = vadd.f32 %v1794_v55, %v595_v53  ;;  %v531_v18 = vmul.f32 %v1758_v35, %v1938_v61  ;;  %v548_v19 = vmul.f32 %v1772_v43, %v1940_v62  ;;  %v1133_v25 = vld [vmem:[%s1704_s20 + $0x158] sm:$0xff]  ;;  %v1102_v38 = vld [vmem:[%s1704_s20 + $0xe0] sm:$0xff] }
  0x9b   : > { %v343_v20 = vmul.f32 4.0, %v327_v52  ;;  %627 = vst [vmem:[%s1839_s7 + $0x38] sm:$0xff] %v611_v3  ;;  %v563_v30 = vadd.f32 %v547_v6, %v530_v54  ;;  %v408_v32 = vmul.f32 4.0, %v1085_v63  ;;  %v474_v33 = vmul.f32 4.0, %v1117_v0  ;;  %v1134_v53 = vld [vmem:[%s1704_s20 + $0x160] sm:$0xff]  ;;  %v329_v0 = vld [vmem:[%s1697_s28 + $0x68] sm:$0xff] }
  0x9c   : > { %2482 = vst [vmem:[#allocation32_spill] sm:$0xff] %v1949_v8  ;;  %v581_v31 = vmul.f32 %v1775_v44, %v1949_v8  ;;  %628 = vst [vmem:[%s1839_s7 + $0x40] sm:$0xff] %v612_v17  ;;  %v564_v42 = vadd.f32 %v548_v19, %v531_v18  ;;  %v344_v51 = vmul.f32 4.0, %v328_v12  ;;  %v409_v52 = vmul.f32 4.0, %v1086_v13  ;;  %v1087_v13 = vld [vmem:[%s1697_s28 + $0xe8] sm:$0xff]  ;;  %v1136_v8 = vld [vmem:[%s1704_s20 + $0x170] sm:$0xff] }
  0x9d   : > { %v1968_v45 = vadd.f32 %v359_v11, %v343_v20  ;;  %v596_v54 = vadd.f32 %v580_v7, %v563_v30  ;;  %v1971_v3 = vadd.f32 %v1101_v24, %v408_v32  ;;  %v1973_v6 = vadd.f32 %v1133_v25, %v474_v33  ;;  %v1119_v18 = vld [vmem:[%s1697_s28 + $0x168] sm:$0xff]  ;;  %v330_v30 = vld [vmem:[%s1697_s28 + $0x70] sm:$0xff] }
  0x9e   : > { %v475_v63 = vmul.f32 4.0, %v1118_v27  ;;  %v597_v17 = vadd.f32 %v581_v31, %v564_v42  ;;  %v1980_v12 = vadd.f32 %v360_v37, %v344_v51  ;;  %v1982_v7 = vadd.f32 %v1102_v38, %v409_v52  ;;  %v361_v27 = vld [vmem:[%s1704_s20 + $0x68] sm:$0xff]  ;;  %v1088_v31 = vld [vmem:[%s1697_s28 + $0xf0] sm:$0xff] }
  0x9f   : > { %2483 = vst [vmem:[#allocation33_spill] sm:$0xff] %v1968_v45  ;;  %2484 = vst [vmem:[#allocation34_spill] sm:$0xff] %v1971_v3  ;;  %v532_v11 = vmul.f32 %v1758_v35, %v1968_v45  ;;  %v613_v19 = vadd.f32 %v1794_v55, %v596_v54  ;;  %v549_v20 = vmul.f32 %v1772_v43, %v1971_v3  ;;  %v345_v38 = vmul.f32 4.0, %v329_v0  ;;  %v1103_v42 = vld [vmem:[%s1704_s20 + $0xe8] sm:$0xff]  ;;  %v1120_v52 = vld [vmem:[%s1697_s28 + $0x170] sm:$0xff] }
  0xa0   : > { %2485 = vst [vmem:[#allocation35_spill] sm:$0xff] %v1973_v6  ;;  %2486 = vst [vmem:[#allocation36_spill] sm:$0xff] %v1980_v12  ;;  %v582_v24 = vmul.f32 %v1775_v44, %v1973_v6  ;;  %v1991_v25 = vadd.f32 %v1134_v53, %v475_v63  ;;  %v614_v32 = vadd.f32 %v1794_v55, %v597_v17  ;;  %v1135_v51 = vld [vmem:[%s1704_s20 + $0x168] sm:$0xff]  ;;  %v410_v63 = vmul.f32 4.0, %v1087_v13  ;;  %v1104_v6 = vld [vmem:[%s1704_s20 + $0xf0] sm:$0xff] }
  0xa1   : > { %2487 = vst [vmem:[#allocation37_spill] sm:$0xff] %v1982_v7  ;;  %v533_v33 = vmul.f32 %v1758_v35, %v1980_v12  ;;  %v550_v37 = vmul.f32 %v1772_v43, %v1982_v7  ;;  %629 = vst [vmem:[%s1839_s7 + $0x48] sm:$0xff] %v613_v19  ;;  %v565_v53 = vadd.f32 %v549_v20, %v532_v11  ;;  %v476_v17 = vmul.f32 4.0, %v1119_v18  ;;  %v362_v12 = vld [vmem:[%s1704_s20 + $0x70] sm:$0xff]  ;;  %v331_v20 = vld [vmem:[%s1697_s28 + $0x78] sm:$0xff] }
  0xa2   : > { %2488 = vst [vmem:[#allocation38_spill] sm:$0xff] %v1991_v25  ;;  %v583_v54 = vmul.f32 %v1775_v44, %v1991_v25  ;;  %630 = vst [vmem:[%s1839_s7 + $0x50] sm:$0xff] %v614_v32  ;;  %v2016_v7 = vadd.f32 %v361_v27, %v345_v38  ;;  %v346_v3 = vmul.f32 4.0, %v330_v30  ;;  %v411_v45 = vmul.f32 4.0, %v1088_v31  ;;  %v1089_v31 = vld [vmem:[%s1697_s28 + $0xf8] sm:$0xff] }
  0xa3   : > { %v566_v0 = vadd.f32 %v550_v37, %v533_v33  ;;  %v598_v11 = vadd.f32 %v582_v24, %v565_v53  ;;  %v2021_v19 = vadd.f32 %v1103_v42, %v410_v63  ;;  %v2023_v13 = vadd.f32 %v1135_v51, %v476_v17  ;;  %v1121_v24 = vld [vmem:[%s1697_s28 + $0x178] sm:$0xff]  ;;  %s761_s28 = sadd.s32 6, %s1714_s5 }
  0xa4   : > { %2489 = vst [vmem:[#allocation39_spill] sm:$0xff] %v2016_v7  ;;  %v477_v18 = vmul.f32 4.0, %v1120_v52  ;;  %v534_v32 = vmul.f32 %v1758_v35, %v2016_v7  ;;  %v2028_v27 = vadd.f32 %v362_v12, %v346_v3  ;;  %v2030_v30 = vadd.f32 %v1104_v6, %v411_v45  ;;  %v363_v3 = vld [vmem:[%s1704_s20 + $0x78] sm:$0xff]  ;;  %s2167_s11 = sld [smem:[#allocation2 + %s761_s28]] }
  0xa5   : > { %v599_v25 = vadd.f32 %v583_v54, %v566_v0  ;;  %v615_v33 = vadd.f32 %v1794_v55, %v598_v11  ;;  %v551_v37 = vmul.f32 %v1772_v43, %v2021_v19  ;;  %v584_v38 = vmul.f32 %v1775_v44, %v2023_v13  ;;  %v1105_v52 = vld [vmem:[%s1704_s20 + $0xf8] sm:$0xff] }
  0xa6   : > { %2490 = vst [vmem:[#allocation40_spill] sm:$0xff] %v2030_v30  ;;  %v2041_v42 = vadd.f32 %v1136_v8, %v477_v18  ;;  %v535_v6 = vmul.f32 %v1758_v35, %v2028_v27  ;;  %v552_v12 = vmul.f32 %v1772_v43, %v2030_v30  ;;  %v347_v51 = vmul.f32 4.0, %v331_v20  ;;  %v1137_v53 = vld [vmem:[%s1704_s20 + $0x178] sm:$0xff]  ;;  %s765_s20 = sadd.s32 8, %s1714_s5 }
  0xa7   : > { %v616_v45 = vadd.f32 %v1794_v55, %v599_v25  ;;  %631 = vst [vmem:[%s1839_s7 + $0x58] sm:$0xff] %v615_v33  ;;  %v567_v54 = vadd.f32 %v551_v37, %v534_v32  ;;  %v412_v63 = vmul.f32 4.0, %v1089_v31  ;;  %v478_v17 = vmul.f32 4.0, %v1121_v24  ;;  %s2182_s5 = sld [smem:[#allocation2 + %s765_s20]] }
  0xa8   : > { %v585_v8 = vmul.f32 %v1775_v44, %v2041_v42  ;;  %v568_v0 = vadd.f32 %v552_v12, %v535_v6  ;;  %v2055_v25 = vadd.f32 %v363_v3, %v347_v51  ;;  %v2058_v11 = vstv %s2005_s0 }
  0xa9   : > { %632 = vst [vmem:[%s1839_s7 + $0x60] sm:$0xff] %v616_v45  ;;  %v2061_v18 = vstv %s2007_s17  ;;  %v600_v20 = vadd.f32 %v584_v38, %v567_v54  ;;  %v2063_v30 = vadd.f32 %v1105_v52, %v412_v63  ;;  %v2065_v32 = vadd.f32 %v1137_v53, %v478_v17 }
  0xaa   : > { %v645_v33 = vmul.f32 %v2058_v11, %v1733_v16  ;;  %v601_v31 = vadd.f32 %v585_v8, %v568_v0  ;;  %v536_v24 = vmul.f32 %v1758_v35, %v2055_v25  ;;  %v662_v37 = vmul.f32 %v2061_v18, %v1739_v21 }
  0xab   : > { %v2074_v3 = vstv %s2019_s30  ;;  %v617_v38 = vadd.f32 %v1794_v55, %v600_v20  ;;  %v553_v45 = vmul.f32 %v1772_v43, %v2063_v30  ;;  %v586_v6 = vmul.f32 %v1775_v44, %v2065_v32 }
  0xac   : > { %v695_v12 = vmul.f32 %v2074_v3, %v1741_v22  ;;  %v618_v51 = vadd.f32 %v1794_v55, %v601_v31  ;;  %v678_v35 = vadd.f32 %v662_v37, %v645_v33  ;;  %v2085_v52 = vstv %s2034_s27 }
  0xad   : > { %v646_v53 = vmul.f32 %v2058_v11, %v1745_v23  ;;  %633 = vst [vmem:[%s1839_s7 + $0x68] sm:$0xff] %v617_v38  ;;  %v569_v54 = vadd.f32 %v553_v45, %v536_v24  ;;  %v663_v8 = vmul.f32 %v2061_v18, %v1750_v28  ;;  %v696_v43 = vmul.f32 %v2074_v3, %v1752_v29 }
  0xae   : > { %v647_v44 = vmul.f32 %v2058_v11, %v1760_v36  ;;  %634 = vst [vmem:[%s1839_s7 + $0x70] sm:$0xff] %v618_v51  ;;  %v711_v63 = vadd.f32 %v695_v12, %v678_v35  ;;  %v664_v17 = vmul.f32 %v2061_v18, %v1766_v40  ;;  %v697_v0 = vmul.f32 %v2074_v3, %v1768_v41 }
  0xaf   : > { %v648_v20 = vmul.f32 %v2058_v11, %v1779_v46  ;;  %v602_v33 = vadd.f32 %v586_v6, %v569_v54  ;;  %v679_v31 = vadd.f32 %v663_v8, %v646_v53  ;;  %v665_v24 = vmul.f32 %v2061_v18, %v1806_v4 }
  0xb0   : > { %v698_v37 = vmul.f32 %v2074_v3, %v1809_v10  ;;  %v728_v38 = vadd.f32 %v2085_v52, %v711_v63  ;;  %v680_v45 = vadd.f32 %v664_v17, %v647_v44  ;;  %v649_v12 = vmul.f32 %v2058_v11, %v1813_v14 }
  0xb1   : > { %v666_v51 = vmul.f32 %v2061_v18, %v1815_v15  ;;  %v619_v35 = vadd.f32 %v1794_v55, %v602_v33  ;;  %v712_v6 = vadd.f32 %v696_v43, %v679_v31  ;;  %v681_v53 = vadd.f32 %v665_v24, %v648_v20 }
  0xb2   : > { %v699_v54 = vmul.f32 %v2074_v3, %v1824_v26  ;;  %1139 = vst [vmem:[%s1839_s7 + $0x80] sm:$0xff] %v728_v38  ;;  %v713_v8 = vadd.f32 %v697_v0, %v680_v45  ;;  %v650_v44 = vmul.f32 %v2058_v11, %v1849_v58  ;;  %v667_v63 = vmul.f32 %v2061_v18, %v1851_v59 }
  0xb3   : > { %v682_v10 = vadd.f32 %v666_v51, %v649_v12  ;;  %635 = vst [vmem:[%s1839_s7 + $0x78] sm:$0xff] %v619_v35  ;;  %v729_v17 = vadd.f32 %v2085_v52, %v712_v6  ;;  %v714_v55 = vadd.f32 %v698_v37, %v681_v53  ;;  %v700_v43 = vmul.f32 %v2074_v3, %v1853_v60 }
  0xb4   : > { %v651_v20 = vmul.f32 %v2058_v11, %v1857_v1  ;;  %v730_v0 = vadd.f32 %v2085_v52, %v713_v8  ;;  %v683_v31 = vadd.f32 %v667_v63, %v650_v44  ;;  %v668_v24 = vmul.f32 %v2061_v18, %v1859_v2 }
  0xb5   : > { %v715_v33 = vadd.f32 %v699_v54, %v682_v10  ;;  %1140 = vst [vmem:[%s1839_s7 + $0x88] sm:$0xff] %v729_v17  ;;  %v731_v38 = vadd.f32 %v2085_v52, %v714_v55  ;;  %v701_v37 = vmul.f32 %v2074_v3, %v1869_v9  ;;  %v652_v45 = vmul.f32 %v2058_v11, %v1888_v39 }
  0xb6   : > { %v669_v12 = vmul.f32 %v2061_v18, %v1891_v49  ;;  %1141 = vst [vmem:[%s1839_s7 + $0x90] sm:$0xff] %v730_v0  ;;  %v716_v51 = vadd.f32 %v700_v43, %v683_v31  ;;  %v684_v35 = vadd.f32 %v668_v24, %v651_v20  ;;  %v702_v6 = vmul.f32 %v2074_v3, %v1893_v50 }
  0xb7   : > { %v732_v10 = vadd.f32 %v2085_v52, %v715_v33  ;;  %1142 = vst [vmem:[%s1839_s7 + $0x98] sm:$0xff] %v731_v38  ;;  %v653_v54 = vmul.f32 %v2058_v11, %v1898_v56  ;;  %v670_v8 = vmul.f32 %v2061_v18, %v1900_v57  ;;  %v703_v44 = vmul.f32 %v2074_v3, %v1909_v5 }
  0xb8   : > { %v685_v53 = vadd.f32 %v669_v12, %v652_v45  ;;  %v733_v63 = vadd.f32 %v2085_v52, %v716_v51  ;;  %v717_v17 = vadd.f32 %v701_v37, %v684_v35  ;;  %v654_v55 = vmul.f32 %v2058_v11, %v1928_v34  ;;  %v2491_v45 = vld [vmem:[#allocation32_spill] sm:$0xff]  ;;  %v2492_v35 = vld [vmem:[#allocation33_spill] sm:$0xff] }
  0xb9   : > { %1143 = vst [vmem:[%s1839_s7 + $0xa0] sm:$0xff] %v732_v10  ;;  %v671_v43 = vmul.f32 %v2061_v18, %v1931_v47  ;;  %v686_v0 = vadd.f32 %v670_v8, %v653_v54  ;;  %v704_v33 = vmul.f32 %v2074_v3, %v1933_v48  ;;  %v655_v31 = vmul.f32 %v2058_v11, %v1938_v61 }
  0xba   : > { %v718_v20 = vadd.f32 %v702_v6, %v685_v53  ;;  %1144 = vst [vmem:[%s1839_s7 + $0xa8] sm:$0xff] %v733_v63  ;;  %v734_v24 = vadd.f32 %v2085_v52, %v717_v17  ;;  %v672_v37 = vmul.f32 %v2061_v18, %v1940_v62  ;;  %v705_v12 = vmul.f32 %v2074_v3, %v2491_v45  ;;  %v2493_v53 = vld [vmem:[#allocation34_spill] sm:$0xff]  ;;  %v2494_v17 = vld [vmem:[#allocation35_spill] sm:$0xff] }
  0xbb   : > { %v687_v38 = vadd.f32 %v671_v43, %v654_v55  ;;  %v719_v51 = vadd.f32 %v703_v44, %v686_v0  ;;  %v656_v6 = vmul.f32 %v2058_v11, %v2492_v35  ;;  %v673_v54 = vmul.f32 %v2061_v18, %v2493_v53  ;;  %v2495_v43 = vld [vmem:[#allocation36_spill] sm:$0xff]  ;;  %v2496_v0 = vld [vmem:[#allocation37_spill] sm:$0xff] }
  0xbc   : > { %v735_v10 = vadd.f32 %v2085_v52, %v718_v20  ;;  %1145 = vst [vmem:[%s1839_s7 + $0xb0] sm:$0xff] %v734_v24  ;;  %v688_v63 = vadd.f32 %v672_v37, %v655_v31  ;;  %v706_v55 = vmul.f32 %v2074_v3, %v2494_v17  ;;  %v657_v45 = vmul.f32 %v2058_v11, %v2495_v43  ;;  %v2497_v24 = vld [vmem:[#allocation38_spill] sm:$0xff] }
  0xbd   : > { %v720_v8 = vadd.f32 %v704_v33, %v687_v38  ;;  %v736_v44 = vadd.f32 %v2085_v52, %v719_v51  ;;  %v689_v20 = vadd.f32 %v673_v54, %v656_v6  ;;  %v674_v53 = vmul.f32 %v2061_v18, %v2496_v0 }
  0xbe   : > { %1146 = vst [vmem:[%s1839_s7 + $0xb8] sm:$0xff] %v735_v10  ;;  %v707_v33 = vmul.f32 %v2074_v3, %v2497_v24  ;;  %v721_v38 = vadd.f32 %v705_v12, %v688_v63  ;;  %v658_v37 = vmul.f32 %v2058_v11, %v2016_v7  ;;  %v675_v10 = vmul.f32 %v2061_v18, %v2021_v19  ;;  %v2498_v63 = vld [vmem:[#allocation40_spill] sm:$0xff] }
  0xbf   : > { %v737_v31 = vadd.f32 %v2085_v52, %v720_v8  ;;  %1147 = vst [vmem:[%s1839_s7 + $0xc0] sm:$0xff] %v736_v44  ;;  %v722_v51 = vadd.f32 %v706_v55, %v689_v20  ;;  %v690_v6 = vadd.f32 %v674_v53, %v657_v45  ;;  %v708_v54 = vmul.f32 %v2074_v3, %v2023_v13 }
  0xc0   : > { %v659_v24 = vmul.f32 %v2058_v11, %v2028_v27  ;;  %v738_v12 = vadd.f32 %v2085_v52, %v721_v38  ;;  %v691_v8 = vadd.f32 %v675_v10, %v658_v37  ;;  %v676_v7 = vmul.f32 %v2061_v18, %v2498_v63 }
  0xc1   : > { %1148 = vst [vmem:[%s1839_s7 + $0xc8] sm:$0xff] %v737_v31  ;;  %v709_v55 = vmul.f32 %v2074_v3, %v2041_v42  ;;  %v739_v45 = vadd.f32 %v2085_v52, %v722_v51  ;;  %v723_v53 = vadd.f32 %v707_v33, %v690_v6  ;;  %v660_v44 = vmul.f32 %v2058_v11, %v2055_v25 }
  0xc2   : > { %v677_v20 = vmul.f32 %v2061_v18, %v2063_v30  ;;  %1149 = vst [vmem:[%s1839_s7 + $0xd0] sm:$0xff] %v738_v12  ;;  %v724_v31 = vadd.f32 %v708_v54, %v691_v8  ;;  %v692_v38 = vadd.f32 %v676_v7, %v659_v24  ;;  %v710_v37 = vmul.f32 %v2074_v3, %v2065_v32 }
  0xc3   : > { %v2217_v10 = vstv %s2167_s11  ;;  %1150 = vst [vmem:[%s1839_s7 + $0xd8] sm:$0xff] %v739_v45  ;;  %v740_v33 = vadd.f32 %v2085_v52, %v723_v53  ;;  %v2224_v6 = vstv %s2175_s4  ;;  %v2230_v3 = vstv %s2182_s5 }
  0xc4   : > { %v693_v51 = vadd.f32 %v677_v20, %v660_v44  ;;  %v770_v11 = vmul.f32 %v2217_v10, %v1733_v16  ;;  %v741_v18 = vadd.f32 %v2085_v52, %v724_v31  ;;  %v725_v54 = vadd.f32 %v709_v55, %v692_v38 }
  0xc5   : > { %v787_v7 = vmul.f32 %v2224_v6, %v1739_v21  ;;  %1151 = vst [vmem:[%s1839_s7 + $0xe0] sm:$0xff] %v740_v33  ;;  %v820_v12 = vmul.f32 %v2230_v3, %v1741_v22  ;;  %v2236_v8 = vstv %s2190_s26  ;;  %v771_v16 = vmul.f32 %v2217_v10, %v1745_v23 }
  0xc6   : > { %v726_v24 = vadd.f32 %v710_v37, %v693_v51  ;;  %1152 = vst [vmem:[%s1839_s7 + $0xe8] sm:$0xff] %v741_v18  ;;  %v742_v55 = vadd.f32 %v2085_v52, %v725_v54  ;;  %v788_v21 = vmul.f32 %v2224_v6, %v1750_v28  ;;  %v821_v53 = vmul.f32 %v2230_v3, %v1752_v29  ;;  %v2499_v37 = vld [vmem:[#allocation31_spill] sm:$0xff] }
  0xc7   : > { %v803_v45 = vadd.f32 %v787_v7, %v770_v11  ;;  %v772_v22 = vmul.f32 %v2217_v10, %v1760_v36  ;;  %v789_v20 = vmul.f32 %v2224_v6, %v1766_v40  ;;  %v822_v23 = vmul.f32 %v2230_v3, %v1768_v41 }
  0xc8   : > { %v743_v44 = vadd.f32 %v2085_v52, %v726_v24  ;;  %1153 = vst [vmem:[%s1839_s7 + $0xf0] sm:$0xff] %v742_v55  ;;  %v804_v38 = vadd.f32 %v788_v21, %v771_v16  ;;  %v773_v28 = vmul.f32 %v2217_v10, %v1779_v46  ;;  %v790_v29 = vmul.f32 %v2224_v6, %v1806_v4 }
  0xc9   : > { %v836_v31 = vadd.f32 %v820_v12, %v803_v45  ;;  %v805_v52 = vadd.f32 %v789_v20, %v772_v22  ;;  %v823_v36 = vmul.f32 %v2230_v3, %v2499_v37  ;;  %v774_v40 = vmul.f32 %v2217_v10, %v1813_v14 }
  0xca   : > { %1154 = vst [vmem:[%s1839_s7 + $0xf8] sm:$0xff] %v743_v44  ;;  %v791_v41 = vmul.f32 %v2224_v6, %v1815_v15  ;;  %v837_v51 = vadd.f32 %v821_v53, %v804_v38  ;;  %v806_v11 = vadd.f32 %v790_v29, %v773_v28  ;;  %v824_v46 = vmul.f32 %v2230_v3, %v1824_v26 }
  0xcb   : > { %v853_v33 = vadd.f32 %v2236_v8, %v836_v31  ;;  %v838_v4 = vadd.f32 %v822_v23, %v805_v52  ;;  %v775_v54 = vmul.f32 %v2217_v10, %v1849_v58  ;;  %v792_v14 = vmul.f32 %v2224_v6, %v1851_v59 }
  0xcc   : > { %v807_v18 = vadd.f32 %v791_v41, %v774_v40  ;;  %v854_v15 = vadd.f32 %v2236_v8, %v837_v51  ;;  %v839_v7 = vadd.f32 %v823_v36, %v806_v11  ;;  %v825_v24 = vmul.f32 %v2230_v3, %v1853_v60  ;;  %v2501_v40 = vld [vmem:[#allocation34_spill] sm:$0xff] }
  0xcd   : > { %1155 = vst [vmem:[%s1839_s7 + $0x100] sm:$0xff] %v853_v33  ;;  %v776_v26 = vmul.f32 %v2217_v10, %v1857_v1  ;;  %v855_v12 = vadd.f32 %v2236_v8, %v838_v4  ;;  %v808_v55 = vadd.f32 %v792_v14, %v775_v54  ;;  %v793_v58 = vmul.f32 %v2224_v6, %v1859_v2  ;;  %v2502_v4 = vld [vmem:[#allocation38_spill] sm:$0xff] }
  0xce   : > { %v840_v16 = vadd.f32 %v824_v46, %v807_v18  ;;  %1156 = vst [vmem:[%s1839_s7 + $0x108] sm:$0xff] %v854_v15  ;;  %v856_v59 = vadd.f32 %v2236_v8, %v839_v7  ;;  %v826_v45 = vmul.f32 %v2230_v3, %v1869_v9  ;;  %v777_v60 = vmul.f32 %v2217_v10, %v1888_v39  ;;  %v2503_v15 = vld [vmem:[#allocation39_spill] sm:$0xff] }
  0xcf   : > { %v794_v1 = vmul.f32 %v2224_v6, %v1891_v49  ;;  %1157 = vst [vmem:[%s1839_s7 + $0x110] sm:$0xff] %v855_v12  ;;  %v841_v53 = vadd.f32 %v825_v24, %v808_v55  ;;  %v809_v44 = vadd.f32 %v793_v58, %v776_v26  ;;  %v827_v2 = vmul.f32 %v2230_v3, %v1893_v50 }
  0xd0   : > { %v857_v21 = vadd.f32 %v2236_v8, %v840_v16  ;;  %1158 = vst [vmem:[%s1839_s7 + $0x118] sm:$0xff] %v856_v59  ;;  %v778_v9 = vmul.f32 %v2217_v10, %v1898_v56  ;;  %v795_v39 = vmul.f32 %v2224_v6, %v1900_v57  ;;  %v828_v49 = vmul.f32 %v2230_v3, %v1909_v5 }
  0xd1   : > { %v810_v22 = vadd.f32 %v794_v1, %v777_v60  ;;  %v858_v20 = vadd.f32 %v2236_v8, %v841_v53  ;;  %v842_v23 = vadd.f32 %v826_v45, %v809_v44  ;;  %v779_v31 = vmul.f32 %v2217_v10, %v1928_v34  ;;  %v2500_v34 = vld [vmem:[#allocation32_spill] sm:$0xff] }
  0xd2   : > { %1159 = vst [vmem:[%s1839_s7 + $0x120] sm:$0xff] %v857_v21  ;;  %v796_v50 = vmul.f32 %v2224_v6, %v1931_v47  ;;  %v811_v28 = vadd.f32 %v795_v39, %v778_v9  ;;  %v829_v56 = vmul.f32 %v2230_v3, %v1933_v48  ;;  %v780_v57 = vmul.f32 %v2217_v10, %v1938_v61 }
  0xd3   : > { %v843_v38 = vadd.f32 %v827_v2, %v810_v22  ;;  %1160 = vst [vmem:[%s1839_s7 + $0x128] sm:$0xff] %v858_v20  ;;  %v859_v5 = vadd.f32 %v2236_v8, %v842_v23  ;;  %v797_v52 = vmul.f32 %v2224_v6, %v1940_v62  ;;  %v830_v37 = vmul.f32 %v2230_v3, %v2500_v34 }
  0xd4   : > { %v812_v29 = vadd.f32 %v796_v50, %v779_v31  ;;  %v844_v36 = vadd.f32 %v828_v49, %v811_v28  ;;  %v781_v48 = vmul.f32 %v2217_v10, %v2492_v35  ;;  %v798_v61 = vmul.f32 %v2224_v6, %v2501_v40 }
  0xd5   : > { %v860_v47 = vadd.f32 %v2236_v8, %v843_v38  ;;  %1161 = vst [vmem:[%s1839_s7 + $0x130] sm:$0xff] %v859_v5  ;;  %v813_v33 = vadd.f32 %v797_v52, %v780_v57  ;;  %v831_v51 = vmul.f32 %v2230_v3, %v2494_v17  ;;  %v782_v62 = vmul.f32 %v2217_v10, %v2495_v43 }
  0xd6   : > { %v845_v41 = vadd.f32 %v829_v56, %v812_v29  ;;  %v861_v11 = vadd.f32 %v2236_v8, %v844_v36  ;;  %v814_v46 = vadd.f32 %v798_v61, %v781_v48  ;;  %v799_v35 = vmul.f32 %v2224_v6, %v2496_v0 }
  0xd7   : > { %1162 = vst [vmem:[%s1839_s7 + $0x138] sm:$0xff] %v860_v47  ;;  %v832_v18 = vmul.f32 %v2230_v3, %v2502_v4  ;;  %v846_v14 = vadd.f32 %v830_v37, %v813_v33  ;;  %v783_v17 = vmul.f32 %v2217_v10, %v2503_v15  ;;  %v800_v43 = vmul.f32 %v2224_v6, %v2021_v19 }
  0xd8   : > { %v862_v54 = vadd.f32 %v2236_v8, %v845_v41  ;;  %1163 = vst [vmem:[%s1839_s7 + $0x140] sm:$0xff] %v861_v11  ;;  %v847_v7 = vadd.f32 %v831_v51, %v814_v46  ;;  %v815_v24 = vadd.f32 %v799_v35, %v782_v62  ;;  %v833_v0 = vmul.f32 %v2230_v3, %v2023_v13 }
  0xd9   : > { %v784_v26 = vmul.f32 %v2217_v10, %v2028_v27  ;;  %v863_v12 = vadd.f32 %v2236_v8, %v846_v14  ;;  %v816_v16 = vadd.f32 %v800_v43, %v783_v17  ;;  %v801_v55 = vmul.f32 %v2224_v6, %v2498_v63 }
  0xda   : > { %1164 = vst [vmem:[%s1839_s7 + $0x148] sm:$0xff] %v862_v54  ;;  %v834_v19 = vmul.f32 %v2230_v3, %v2041_v42  ;;  %v864_v58 = vadd.f32 %v2236_v8, %v847_v7  ;;  %v848_v59 = vadd.f32 %v832_v18, %v815_v24  ;;  %v785_v13 = vmul.f32 %v2217_v10, %v2055_v25 }
  0xdb   : > { %v802_v27 = vmul.f32 %v2224_v6, %v2063_v30  ;;  %1165 = vst [vmem:[%s1839_s7 + $0x150] sm:$0xff] %v863_v12  ;;  %v849_v45 = vadd.f32 %v833_v0, %v816_v16  ;;  %v817_v60 = vadd.f32 %v801_v55, %v784_v26  ;;  %v835_v63 = vmul.f32 %v2230_v3, %v2065_v32 }
  0xdc   : > { %1166 = vst [vmem:[%s1839_s7 + $0x158] sm:$0xff] %v864_v58  ;;  %v865_v42 = vadd.f32 %v2236_v8, %v848_v59 }
  0xdd   : > { %v818_v1 = vadd.f32 %v802_v27, %v785_v13  ;;  %v866_v21 = vadd.f32 %v2236_v8, %v849_v45  ;;  %v850_v53 = vadd.f32 %v834_v19, %v817_v60 }
  0xde   : > { %1167 = vst [vmem:[%s1839_s7 + $0x160] sm:$0xff] %v865_v42 }
  0xdf   : > { %v851_v25 = vadd.f32 %v835_v63, %v818_v1  ;;  %1168 = vst [vmem:[%s1839_s7 + $0x168] sm:$0xff] %v866_v21  ;;  %v867_v30 = vadd.f32 %v2236_v8, %v850_v53 }
  0xe1   : > { %v868_v10 = vadd.f32 %v2236_v8, %v851_v25  ;;  %1169 = vst [vmem:[%s1839_s7 + $0x170] sm:$0xff] %v867_v30 }
  0xe3   : > { %1170 = vst [vmem:[%s1839_s7 + $0x178] sm:$0xff] %v868_v10 }
  0xe4   : > { %s1179_s24 = sshll.u32 %s1440_s19, 4  ;;  %s1185_s9 = smul.u32 192, %s1436_s18 }
  0xe5   : > { %s919_s10 = sshll.u32 %s1839_s7, 4  ;;  %s1467_s0 = smov 2048   ;;  %s920_s10 = int_to_ptr.vmem [resolvable:$true] %s919_s10 }
  0xe6   : > { %s900_s23 = sadd.s32 %s1185_s9, %s1179_s24  ;;  %p2504_p12 = scmp.ne.s32.totalorder %s2472_s12, 0 }
  0xe7   : > { %s1173_s22 = sshll.u32 %s900_s23, 7  ;;  %s1468_s30 = smov 8192  }
  0xe8   : > { %1208 = sst [smem:[#allocation15]] (%p2504_p12), %s1467_s0  ;;  %s902_s8 = scalar_lea.hbm %s2426_s3, %s1173_s22 }
  0xe9   : > { %1209 = sst [smem:[#allocation15 + $0x1]] (%p2504_p12), %s1468_s30  ;;  %s1469_s27 = smov 8  }
  0xea   : > { %1210 = sst [smem:[#allocation15 + $0x2]] (%p2504_p12), %s1469_s27  ;;  %s1470_s18 = smov 256  }
  0xeb   : > { %1211 = sst [smem:[#allocation15 + $0x3]] (%p2504_p12), %s1470_s18  ;;  %s1471_s19 = smov 16  }
  0xec   : > { %1212 = sst [smem:[#allocation15 + $0x4]] (%p2504_p12), %s1470_s18  ;;  %s1472_s7 = smov [#allocation14]  }
  0xed   : > { %1213 = sst [smem:[#allocation15 + $0x5]] (%p2504_p12), %s1471_s19  ;;  %s1473_s28 = smov 0  }
  0xee   : > { %1214 = dma.general (%p2504_p12), %s920_s10, 6144, %s902_s8, %s887_s6, %s1472_s7, [#allocation15], %s1473_s28, 0  }
  0xef PF: > { %s2505_s29 = sld [smem:[#allocation25_spill]]  ;;  %s2506_s20 = sld [smem:[#allocation22_spill]] }
  0xf0   : > { %s2507_s11 = sld [smem:[#allocation30_spill]] }
  0xf5   : > { %p1226_p13 = scmp.ge.s32.totalorder %s2505_s29, 2  ;;  %s947_s25 = sand.u32 1, %s2506_s20  }
  0xf6   : > { %p2508_p10 = scmp.ne.s32.totalorder %s2507_s11, 0  ;;  %s948_s4 = scalar_lea.sflag [#allocation4], %s947_s25 }
  0xf8   : > { %p1221_p1 = pnand %p1226_p13, %p2508_p10 }
  0xfa   : > { %1407 = dma.done.wait (!%p1221_p1), %s948_s4, 6144  }
  0xfb   : > { %1409 = vsyncadd (!%p1221_p1), %s948_s4, 4294961152  ;;  %s23_s22 = sadd.s32 1, %s2505_s29   ;;  %s2509_s5 = sld [smem:[#allocation28_spill]] }
  0xfc   : > { %p20_p9 = scmp.ge.s32.totalorder %s23_s22, 10   ;;  %s2510_s26 = sld [smem:[#allocation23_spill]] }
  0xfd   : > { %s2511_s17 = sld [smem:[#allocation29_spill]]  ;;  %s2512_s18 = sld [smem:[#allocation24_spill]] }
  0xfe   : > { %s2513_s20 = sld [smem:[#allocation26_spill]]  ;;  %s2514_s6 = sld [smem:[#allocation27_spill]] }
  0xff   : > { %s2515_s12 = smov %s1416_s13  ;;  %s2516_s13 = smov %s1420_s14 }
 0x100   : > { %s2518_s15 = smov %s1428_s16  ;;  %s2520_s19 = smov %s1448_s21 }
 0x101   : > { %s2517_s14 = smov %s2509_s5  ;;  %22 = sbr.rel (!%p20_p9) target bundleno = 14 (0xe), region = 116 }
 0x102   : > { %s2519_s16 = smov %s2510_s26 }
 0x104   : > { %s2521_s21 = smov %s2514_s6 }
 0x108   :  { %953 = vsyncpa [#allocation3], 1 }
 0x109   :  { %955 = vsyncpa [#allocation3 + $0x1], 1 }
 0x10a   :  { %956 = vsyncpa [#allocation8], 1 }
 0x10b   :  { %958 = vsyncpa [#allocation8 + $0x1], 1 }
 0x10c   :  { %959 = vsyncpa [#allocation4], 1 }
 0x10d   :  { %961 = vsyncpa [#allocation4 + $0x1], 1 }
 0x10e   :  { %962 = vsyncpa [#allocation5], 1 }
 0x10f   :  { %964 = vsyncpa [#allocation5 + $0x1], 1 }

</bundles_post_ra>
